<compile_context>
chip_gen: v5e
topology: v5e:2x2
jax: 0.10.0
libtpu: 0.0.40
codegen_flags: <defaults>
</compile_context>

<pallas_src>
import jax
import jax.numpy as jnp
import numpy as np
from jax import lax
from jax.experimental import pallas as pl
from jax.experimental.pallas import tpu as pltpu

# -------------------- GoldE hyper-parameters (small, deterministic) ------------
NENTITY = 32
NRELATION = 4
HIDDEN_DIM_TOTAL = 32
HOUSE_DIM = 4
P = 2
Q = HOUSE_DIM - P                     # 2
GAMMA = 12.0
EPSILON = 2.0
E_NORM = 0.5                          # c_clamp
R_NORM = 0.5
S_WEIGHT = 1.0
ELL_MIN = 0.5
ELL_MAX = 1.0
P_BIAS = True
NORMALIZE = False                     # spherical distance via norm branch
MAP = "lorentz"                       # any value != 'exp' -> sqrt-lift split_pq

D = HIDDEN_DIM_TOTAL // HOUSE_DIM     # hidden_dim == relation_dim == entity_dim = 8
EMB_RANGE = (GAMMA + EPSILON) / (D * HOUSE_DIM ** 0.5)
R2 = NRELATION * 2

BATCH = 2
NEG = 8

SUB = 128            # in-kernel lane sub-chunk (1 vreg per live plane)
MAX_NEG_TILE = 2048  # BlockSpec tile over negatives; sweep 1024-4096.
                     # v5e/v6e (128 MiB VMEM) can go higher; keep v7x <= ~2048.

# Plane indices inside the packed per-(batch, d) `relhead` operand (B, D, K_PLANES)
_LHP0, _LHP1, _FHQ, _HQS0, _HQS1, _SET0, _SET1, _NRC, _IRC = range(9)
K_PLANES = 9


# -------------------- parameter init (matches nn.Module __init__) --------------
def init_params(key):
    k1, k2, k3, k4, k5 = jax.random.split(key, 5)
    return dict(
        entity_embedding=jax.random.uniform(
            k1, (NENTITY, D, HOUSE_DIM), jnp.float32, -EMB_RANGE, EMB_RANGE),
        head_bias=jnp.zeros((NENTITY,), jnp.float32),      # gathered but unused by GoldE
        tail_bias=jnp.zeros((NENTITY,), jnp.float32),      # gathered but unused by GoldE
        relation_p=jax.random.uniform(
            k2, (R2, D, P * P), jnp.float32, -EMB_RANGE, EMB_RANGE),
        relation_q=jax.random.uniform(
            k3, (R2, D, Q * Q), jnp.float32, -EMB_RANGE, EMB_RANGE),
        relation_v=jnp.zeros((R2, D, P), jnp.float32),     # init.constant_(0.0)
        relation_bias=jax.random.uniform(
            k4, (R2, D, P * 3), jnp.float32, -EMB_RANGE, EMB_RANGE),
        relation_theta=jax.random.uniform(
            k5, (R2, D, Q), jnp.float32, 0.5, 1.0),
        c=jnp.full((R2, D, 1), -1.0, jnp.float32),
    )


# -------------------- process_relation (plain-JAX parameter setup) -------------
def process_relation(params):
    elliptic_theta = jnp.clip(jnp.abs(params["relation_theta"]), ELL_MIN, ELL_MAX)

    # normalize each of the P chunks of relation_p along its own (last) axis
    rp4 = params["relation_p"].reshape(R2, D, P, P)
    rp_norm = jnp.maximum(jnp.sqrt(jnp.sum(rp4 * rp4, axis=-1, keepdims=True)), 1e-12)
    r_p = (rp4 / rp_norm).reshape(R2, D, P * P)

    # elliptic factor for each of the Q chunks of relation_q
    rq4 = params["relation_q"].reshape(R2, D, Q, Q)
    et = elliptic_theta[:, :, None, :]
    b_norm = jnp.sum(rq4 * et * rq4, axis=-1, keepdims=True)
    r_factor = (rq4 * et / b_norm).reshape(R2, D, Q * Q)
    r_q = params["relation_q"]

    # torch.renorm(relation_v, p=2, dim=-2, maxnorm=R_NORM) on the flattened rows
    rv = params["relation_v"].reshape(-1, P)
    rv_norm = jnp.sqrt(jnp.sum(rv * rv, axis=-1, keepdims=True))
    scale = jnp.where(rv_norm > R_NORM, R_NORM / (rv_norm + 1e-7), 1.0)
    r_v = (rv * scale).reshape(R2, D, P)

    sqrt_elliptic_theta = jnp.sqrt(elliptic_theta)
    return r_p, r_q, r_v, r_factor, elliptic_theta, sqrt_elliptic_theta


# -------------------- head-side transform (hoisted out of the kernel) ----------
def _head_transform(params, head_part):
    """Per-(batch, d) head/relation GoldE math done once on the host side.

    Packs exactly what the per-negative kernel needs into (B, D, K_PLANES):
      [lhp0, lhp1, fhq, hq0*sqrt(theta0), hq1*sqrt(theta1),
       sqrt(theta0), sqrt(theta1), -beta, 1/beta]
    """
    beta = jnp.clip(params["c"], -1.5, -1.0 + E_NORM)       # strictly negative (invariant)
    r_p, r_q, r_v, r_f, _e_theta, sqrt_e_theta = process_relation(params)
    rel = head_part[:, 1]

    # head_bias / tail_bias are gathered in the PyTorch forward but never used by GoldE.
    head = jnp.take(params["entity_embedding"], head_part[:, 0], axis=0)     # (B, D, HD)
    rv = jnp.take(r_v, rel, axis=0)
    rp = jnp.take(r_p, rel, axis=0)
    rq = jnp.take(r_q, rel, axis=0)
    rf = jnp.take(r_f, rel, axis=0)
    rc = jnp.take(beta, rel, axis=0)                                         # (B, D, 1)
    rb = jnp.take(params["relation_bias"], rel, axis=0)[..., P:2 * P]        # middle chunk
    sqet = jnp.take(sqrt_e_theta, rel, axis=0)                               # (B, D, Q)

    head_p, head_q = head[..., :P], head[..., P:]

    # split_pq (non-'exp' map): hyperboloid lift of the head p-part
    head_x0 = jnp.sqrt(-rc + jnp.sum(head_p * head_p, axis=-1, keepdims=True))

    # elliptic (q-part) reflections of the head
    hq = head_q
    for i in range(Q):
        hq = hq - 2.0 * jnp.sum(rf[..., i * Q:(i + 1) * Q] * hq, axis=-1,
                                keepdims=True) * rq[..., i * Q:(i + 1) * Q]

    # Lorentz boost by relation_v
    rv2 = jnp.sum(rv * rv, axis=-1, keepdims=True)
    g = 1.0 / jnp.sqrt(1.0 - rv2)
    vh = jnp.sum(rv * head_p, axis=-1, keepdims=True)
    fhq = g * head_x0 - g * vh                                               # (B, D, 1)
    fhp = -g * head_x0 * rv + head_p + (g * g / (1.0 + g)) * vh * rv         # (B, D, P)

    # hyperbolic (p-part) Householder reflections
    lhp = fhp
    for i in range(P):
        lhp = lhp - 2.0 * jnp.sum(rp[..., i * P:(i + 1) * P] * lhp, axis=-1,
                                  keepdims=True) * rp[..., i * P:(i + 1) * P]

    if P_BIAS:
        p_norm = jnp.sqrt(jnp.sum(lhp * lhp, axis=-1, keepdims=True))
        lhp = lhp + rb
        lhp = lhp / jnp.maximum(jnp.sqrt(jnp.sum(lhp * lhp, axis=-1, keepdims=True)),
                                1e-12) * p_norm

    hqs = hq * sqet
    return jnp.concatenate([lhp, fhq, hqs, sqet, -rc, 1.0 / rc], axis=-1)    # (B, D, 9)


# -------------------- Pallas kernel: per-negative GoldE score -------------------
def golde_score_kernel(relhead_ref, tail_ref, out_ref):
    # relhead_ref : (1, D, K_PLANES)            VMEM-resident across the NEG-tile axis
    # tail_ref    : (1, HOUSE_DIM, D, NEG_TILE) lane-dense tail component planes
    # out_ref     : (1, 1, NEG_TILE)
    d_dim = tail_ref.shape[2]
    tile = tail_ref.shape[3]
    n_sub = tile // SUB

    rel = relhead_ref[0]                                     # (D, K_PLANES)

    # Hoist the 9 head-plane lane broadcasts above the sub-chunk walk
    # (JAX does not CSE broadcast_in_dim inside the loop).
    def plane(k):
        return jnp.broadcast_to(rel[:, k:k + 1], (d_dim, SUB))

    lhp0, lhp1 = plane(_LHP0), plane(_LHP1)
    fhq = plane(_FHQ)
    hqs0, hqs1 = plane(_HQS0), plane(_HQS1)
    set0, set1 = plane(_SET0), plane(_SET1)
    nrc, irc = plane(_NRC), plane(_IRC)

    # Walk the NEG tile in 128-lane sub-chunks with static slices so the live
    # vector working set stays at ~1 vreg per plane regardless of NEG_TILE.
    for s in range(n_sub):
        lo, hi = s * SUB, (s + 1) * SUB
        tp0 = tail_ref[0, 0, :, lo:hi]                       # (D, SUB)
        tp1 = tail_ref[0, 1, :, lo:hi]
        tq0 = tail_ref[0, 2, :, lo:hi]
        tq1 = tail_ref[0, 3, :, lo:hi]

        # split_pq of the tail: nrc = -beta > 0 (beta clipped <= -1+E_NORM), so the
        # sqrt is finite for every lane including padded ones.
        tail_x0 = jnp.sqrt(nrc + tp0 * tp0 + tp1 * tp1)

        # spherical distance (NORMALIZE == False branch), Q = 2 unrolled
        d0 = hqs0 - tq0 * set0
        d1 = hqs1 - tq1 * set1
        spe_d = jnp.sqrt(d0 * d0 + d1 * d1)

        # Lorentzian inner product with theta = (+1, +1, -1) folded in
        inner = lhp0 * tp0 + lhp1 * tp1 - fhq * tail_x0
        x = jnp.maximum(inner * irc, 1.0 + 1e-5)
        hyp_d = jnp.log(x + jnp.sqrt(x * x - 1.0))           # acosh

        # single cross-sublane reduce over D per sub-chunk
        total = jnp.sum(hyp_d + abs(S_WEIGHT) * spe_d, axis=0, keepdims=True)  # (1, SUB)
        out_ref[0, :, lo:hi] = GAMMA - total


# -------------------- operand packing (tail-batch mode, plain-JAX glue) ---------
def _prepare_kernel_operands(params, head_part, tail_part, n_pad):
    relhead = _head_transform(params, head_part)                         # (B, D, 9)

    B, N = tail_part.shape
    # Pad the *indices* (with entity 0) rather than the gathered array: padded
    # lanes hold real finite embeddings and are sliced off after the kernel.
    tail_idx = jnp.pad(tail_part, ((0, 0), (0, n_pad - N)))
    # TODO(synk): at realistic entity-table sizes, fuse this gather into the kernel
    # (entity_embedding kept in HBM via memory_space=pl.ANY + scalar-prefetched
    # indices + batched make_async_copy) so the gathered/transposed tail is not
    # materialized in HBM before the kernel reads it.
    tail = jnp.take(params["entity_embedding"], tail_idx.reshape(-1), axis=0)
    tail = tail.reshape(B, n_pad, D, HOUSE_DIM)
    tail_planes = jnp.transpose(tail, (0, 3, 2, 1))                      # (B, HD, D, n_pad)
    return relhead, tail_planes


# -------------------- wrapper: pallas_call ---------------------------------------
@jax.jit
def golde_forward(params, head_part, tail_part):
    B = head_part.shape[0]
    N = tail_part.shape[1]

    n_pad = pl.cdiv(N, SUB) * SUB
    neg_tile = min(MAX_NEG_TILE, n_pad)
    n_pad = pl.cdiv(n_pad, neg_tile) * neg_tile
    n_tiles = n_pad // neg_tile

    relhead, tail_planes = _prepare_kernel_operands(params, head_part, tail_part, n_pad)

    grid_spec = pltpu.PrefetchScalarGridSpec(
        num_scalar_prefetch=0,
        grid=(B, n_tiles),
        in_specs=[
            # packed head/relation planes: same block across the NEG-tile axis ->
            # Pallas keeps it VMEM-resident (no re-fetch between j steps).
            pl.BlockSpec((1, D, K_PLANES), lambda b, j: (b, 0, 0)),
            # tail component planes: tiled over NEG, lane-dense, auto double-buffered.
            pl.BlockSpec((1, HOUSE_DIM, D, neg_tile), lambda b, j: (b, 0, 0, j)),
        ],
        out_specs=pl.BlockSpec((1, 1, neg_tile), lambda b, j: (b, 0, j)),
    )
    scores = pl.pallas_call(
        golde_score_kernel,
        out_shape=jax.ShapeDtypeStruct((B, 1, n_pad), jnp.float32),
        grid_spec=grid_spec,
        compiler_params=pltpu.CompilerParams(
            dimension_semantics=("parallel", "parallel"),
            vmem_limit_bytes=32 * 1024 * 1024),
    )(relhead, tail_planes)
    return scores[:, 0, :N]


# -------------------- pure-JAX reference (mirrors PyTorch GoldE) -----------------
def golde_forward_ref(params, head_part, tail_part):
    beta = jnp.clip(params["c"], -1.5, -1.0 + E_NORM)
    r_p, r_q, r_v, r_f, e_theta, _ = process_relation(params)

    B = head_part.shape[0]
    N = tail_part.shape[1]
    rel = head_part[:, 1]

    head = jnp.take(params["entity_embedding"], head_part[:, 0], axis=0)[:, None]   # (B,1,D,HD)
    tail = jnp.take(params["entity_embedding"], tail_part.reshape(-1), axis=0
                    ).reshape(B, N, D, HOUSE_DIM)
    rv = jnp.take(r_v, rel, axis=0)[:, None]
    rp = jnp.take(r_p, rel, axis=0)[:, None]
    rq = jnp.take(r_q, rel, axis=0)[:, None]
    rf = jnp.take(r_f, rel, axis=0)[:, None]
    rc = jnp.take(beta, rel, axis=0)[:, None]
    rbias = jnp.take(params["relation_bias"], rel, axis=0)[:, None]
    et = jnp.take(e_theta, rel, axis=0)[:, None]

    head_p, head_q = head[..., :P], head[..., P:]
    tail_p, tail_q = tail[..., :P], tail[..., P:]
    _, rbias_mid, _ = jnp.split(rbias, 3, axis=-1)

    def split_pq(ep, c):
        x0 = jnp.sqrt(-c + jnp.sum(ep * ep, axis=-1, keepdims=True))
        return jnp.concatenate([ep, x0], axis=-1)

    head_x = split_pq(head_p, rc)
    tail_x = split_pq(tail_p, rc)

    hq = head_q
    for i in range(Q):
        hq = hq - 2.0 * jnp.sum(rf[..., i * Q:(i + 1) * Q] * hq, axis=-1,
                                keepdims=True) * rq[..., i * Q:(i + 1) * Q]

    hp, t1 = head_x[..., :P], head_x[..., P:]
    rv2 = jnp.sum(rv * rv, axis=-1, keepdims=True)
    g = 1.0 / jnp.sqrt(1.0 - rv2)
    vh = jnp.sum(rv * hp, axis=-1, keepdims=True)
    fhq = g * t1 - g * vh
    fhp = -g * t1 * rv + (hp + g ** 2 / (1.0 + g) * vh * rv)

    lhp = fhp
    for i in range(P):
        lhp = lhp - 2.0 * jnp.sum(rp[..., i * P:(i + 1) * P] * lhp, axis=-1,
                                  keepdims=True) * rp[..., i * P:(i + 1) * P]
    if P_BIAS:
        p_norm = jnp.sqrt(jnp.sum(lhp * lhp, axis=-1, keepdims=True))
        lhp = lhp + rbias_mid
        lhp = lhp / jnp.maximum(jnp.sqrt(jnp.sum(lhp * lhp, axis=-1, keepdims=True)),
                                1e-12) * p_norm

    theta = jnp.concatenate([jnp.ones((1, 1, 1, P), jnp.float32),
                             -jnp.ones((1, 1, 1, 1), jnp.float32)], axis=-1)
    l_head = jnp.concatenate([lhp, fhq], axis=-1)
    l_tail = tail_x

    diff = (hq - tail_q) * jnp.sqrt(et)
    spe = jnp.sum(jnp.sqrt(jnp.sum(diff * diff, axis=-1)), axis=-1)

    x = jnp.sum(l_head * theta * l_tail, axis=-1) / rc[..., 0]
    x = jnp.maximum(x, 1.0 + 1e-5)
    hyp = jnp.sum(jnp.log(x + jnp.sqrt(x * x - 1.0)), axis=-1)
    return GAMMA - (hyp + abs(S_WEIGHT) * spe)


# -------------------- main --------------------------------------------------------
if __name__ == "__main__":
    key = jax.random.PRNGKey(0)
    kp, kh, kr, kt, kn = jax.random.split(key, 5)
    params = init_params(kp)

    # positive triples (head, relation, tail) and negative tail candidates
    head_ids = jax.random.randint(kh, (BATCH,), 0, NENTITY)
    rel_ids = jax.random.randint(kr, (BATCH,), 0, R2)
    tail_pos = jax.random.randint(kt, (BATCH,), 0, NENTITY)
    head_part = jnp.stack([head_ids, rel_ids, tail_pos], axis=1).astype(jnp.int32)   # (B, 3)
    tail_part = jax.random.randint(kn, (BATCH, NEG), 0, NENTITY).astype(jnp.int32)   # (B, N)

    score = jax.block_until_ready(golde_forward(params, head_part, tail_part))

    ref = golde_forward_ref(params, head_part, tail_part)
    np.testing.assert_allclose(np.asarray(score), np.asarray(ref), rtol=1e-3, atol=1e-3)

    # TODO(synk): 'head-batch' mode, map=='exp' / normalize==True branches and the
    # training/eval loops (loss, adversarial sampling, ranking) are host-side glue
    # and are not implemented in the kernel.
    print("KERNEL_OK")
</pallas_src>

<mosaic_0001>
module attributes {stable_mosaic.version = 11 : i64} {
  func.func @golde_score_kernel(%arg0: i32, %arg1: i32, %arg2: memref<1x8x9xf32, #tpu.memory_space<vmem>>, %arg3: memref<1x4x8x128xf32, #tpu.memory_space<vmem>>, %arg4: memref<1x1x128xf32, #tpu.memory_space<vmem>>) attributes {dimension_semantics = [#tpu.dimension_semantics<parallel>, #tpu.dimension_semantics<parallel>], iteration_bounds = array<i64: 2, 1>, scalar_prefetch = 0 : i64, scratch_operands = 0 : i64, tpu.core_type = #tpu.core_type<tc>, window_params = [{transform_indices = @transform_0, window_bounds = array<i64: 1, 8, 9>}, {transform_indices = @transform_1, window_bounds = array<i64: 1, 4, 8, 128>}, {transform_indices = @transform_2, window_bounds = array<i64: 1, 1, 128>}]} {
    %c0 = arith.constant 0 : index
    %c0_0 = arith.constant 0 : index
    %c0_1 = arith.constant 0 : index
    %0 = vector.load %arg2[%c0, %c0_0, %c0_1] : memref<1x8x9xf32, #tpu.memory_space<vmem>>, vector<1x8x9xf32>
    %1 = vector.shape_cast %0 : vector<1x8x9xf32> to vector<8x9xf32>
    %2 = vector.extract_strided_slice %1 {offsets = [0, 0], sizes = [8, 1], strides = [1, 1]} : vector<8x9xf32> to vector<8x1xf32>
    %3 = vector.shape_cast %2 : vector<8x1xf32> to vector<8x1xf32>
    %4 = vector.broadcast %3 : vector<8x1xf32> to vector<8x128xf32>
    %5 = vector.extract_strided_slice %1 {offsets = [0, 1], sizes = [8, 1], strides = [1, 1]} : vector<8x9xf32> to vector<8x1xf32>
    %6 = vector.shape_cast %5 : vector<8x1xf32> to vector<8x1xf32>
    %7 = vector.broadcast %6 : vector<8x1xf32> to vector<8x128xf32>
    %8 = vector.extract_strided_slice %1 {offsets = [0, 2], sizes = [8, 1], strides = [1, 1]} : vector<8x9xf32> to vector<8x1xf32>
    %9 = vector.shape_cast %8 : vector<8x1xf32> to vector<8x1xf32>
    %10 = vector.broadcast %9 : vector<8x1xf32> to vector<8x128xf32>
    %11 = vector.extract_strided_slice %1 {offsets = [0, 3], sizes = [8, 1], strides = [1, 1]} : vector<8x9xf32> to vector<8x1xf32>
    %12 = vector.shape_cast %11 : vector<8x1xf32> to vector<8x1xf32>
    %13 = vector.broadcast %12 : vector<8x1xf32> to vector<8x128xf32>
    %14 = vector.extract_strided_slice %1 {offsets = [0, 4], sizes = [8, 1], strides = [1, 1]} : vector<8x9xf32> to vector<8x1xf32>
    %15 = vector.shape_cast %14 : vector<8x1xf32> to vector<8x1xf32>
    %16 = vector.broadcast %15 : vector<8x1xf32> to vector<8x128xf32>
    %17 = vector.extract_strided_slice %1 {offsets = [0, 5], sizes = [8, 1], strides = [1, 1]} : vector<8x9xf32> to vector<8x1xf32>
    %18 = vector.shape_cast %17 : vector<8x1xf32> to vector<8x1xf32>
    %19 = vector.broadcast %18 : vector<8x1xf32> to vector<8x128xf32>
    %20 = vector.extract_strided_slice %1 {offsets = [0, 6], sizes = [8, 1], strides = [1, 1]} : vector<8x9xf32> to vector<8x1xf32>
    %21 = vector.shape_cast %20 : vector<8x1xf32> to vector<8x1xf32>
    %22 = vector.broadcast %21 : vector<8x1xf32> to vector<8x128xf32>
    %23 = vector.extract_strided_slice %1 {offsets = [0, 7], sizes = [8, 1], strides = [1, 1]} : vector<8x9xf32> to vector<8x1xf32>
    %24 = vector.shape_cast %23 : vector<8x1xf32> to vector<8x1xf32>
    %25 = vector.broadcast %24 : vector<8x1xf32> to vector<8x128xf32>
    %26 = vector.extract_strided_slice %1 {offsets = [0, 8], sizes = [8, 1], strides = [1, 1]} : vector<8x9xf32> to vector<8x1xf32>
    %27 = vector.shape_cast %26 : vector<8x1xf32> to vector<8x1xf32>
    %28 = vector.broadcast %27 : vector<8x1xf32> to vector<8x128xf32>
    %c0_2 = arith.constant 0 : index
    %c0_3 = arith.constant 0 : index
    %c0_4 = arith.constant 0 : index
    %c0_5 = arith.constant 0 : index
    %29 = vector.load %arg3[%c0_2, %c0_3, %c0_4, %c0_5] : memref<1x4x8x128xf32, #tpu.memory_space<vmem>>, vector<1x1x8x128xf32>
    %30 = vector.shape_cast %29 : vector<1x1x8x128xf32> to vector<8x128xf32>
    %c0_6 = arith.constant 0 : index
    %c1 = arith.constant 1 : index
    %c0_7 = arith.constant 0 : index
    %c0_8 = arith.constant 0 : index
    %31 = vector.load %arg3[%c0_6, %c1, %c0_7, %c0_8] : memref<1x4x8x128xf32, #tpu.memory_space<vmem>>, vector<1x1x8x128xf32>
    %32 = vector.shape_cast %31 : vector<1x1x8x128xf32> to vector<8x128xf32>
    %c0_9 = arith.constant 0 : index
    %c2 = arith.constant 2 : index
    %c0_10 = arith.constant 0 : index
    %c0_11 = arith.constant 0 : index
    %33 = vector.load %arg3[%c0_9, %c2, %c0_10, %c0_11] : memref<1x4x8x128xf32, #tpu.memory_space<vmem>>, vector<1x1x8x128xf32>
    %34 = vector.shape_cast %33 : vector<1x1x8x128xf32> to vector<8x128xf32>
    %c0_12 = arith.constant 0 : index
    %c3 = arith.constant 3 : index
    %c0_13 = arith.constant 0 : index
    %c0_14 = arith.constant 0 : index
    %35 = vector.load %arg3[%c0_12, %c3, %c0_13, %c0_14] : memref<1x4x8x128xf32, #tpu.memory_space<vmem>>, vector<1x1x8x128xf32>
    %36 = vector.shape_cast %35 : vector<1x1x8x128xf32> to vector<8x128xf32>
    %37 = arith.mulf %30, %30 : vector<8x128xf32>
    %38 = arith.addf %25, %37 : vector<8x128xf32>
    %39 = arith.mulf %32, %32 : vector<8x128xf32>
    %40 = arith.addf %38, %39 : vector<8x128xf32>
    %41 = math.sqrt %40 : vector<8x128xf32>
    %42 = arith.mulf %34, %19 : vector<8x128xf32>
    %43 = arith.subf %13, %42 : vector<8x128xf32>
    %44 = arith.mulf %36, %22 : vector<8x128xf32>
    %45 = arith.subf %16, %44 : vector<8x128xf32>
    %46 = arith.mulf %43, %43 : vector<8x128xf32>
    %47 = arith.mulf %45, %45 : vector<8x128xf32>
    %48 = arith.addf %46, %47 : vector<8x128xf32>
    %49 = math.sqrt %48 : vector<8x128xf32>
    %50 = arith.mulf %4, %30 : vector<8x128xf32>
    %51 = arith.mulf %7, %32 : vector<8x128xf32>
    %52 = arith.addf %50, %51 : vector<8x128xf32>
    %53 = arith.mulf %10, %41 : vector<8x128xf32>
    %54 = arith.subf %52, %53 : vector<8x128xf32>
    %55 = arith.mulf %54, %28 : vector<8x128xf32>
    %cst = arith.constant 1.000010e+00 : f32
    %56 = vector.broadcast %cst : f32 to vector<8x128xf32>
    %57 = arith.maximumf %55, %56 : vector<8x128xf32>
    %58 = arith.mulf %57, %57 : vector<8x128xf32>
    %cst_15 = arith.constant 1.000000e+00 : f32
    %59 = vector.broadcast %cst_15 : f32 to vector<8x128xf32>
    %60 = arith.subf %58, %59 : vector<8x128xf32>
    %61 = math.sqrt %60 : vector<8x128xf32>
    %62 = arith.addf %57, %61 : vector<8x128xf32>
    %63 = math.log %62 : vector<8x128xf32>
    %cst_16 = arith.constant 1.000000e+00 : f32
    %64 = vector.broadcast %cst_16 : f32 to vector<8x128xf32>
    %65 = arith.mulf %64, %49 : vector<8x128xf32>
    %66 = arith.addf %63, %65 : vector<8x128xf32>
    %cst_17 = arith.constant dense<0.000000e+00> : vector<128xf32>
    %67 = vector.multi_reduction <add>, %66, %cst_17 [0] : vector<8x128xf32> to vector<128xf32>
    %68 = vector.shape_cast %67 : vector<128xf32> to vector<1x128xf32>
    %cst_18 = arith.constant 1.200000e+01 : f32
    %69 = vector.broadcast %cst_18 : f32 to vector<1x128xf32>
    %70 = arith.subf %69, %68 : vector<1x128xf32>
    %c0_19 = arith.constant 0 : index
    %c0_20 = arith.constant 0 : index
    %c0_21 = arith.constant 0 : index
    %71 = vector.load %arg4[%c0_19, %c0_20, %c0_21] : memref<1x1x128xf32, #tpu.memory_space<vmem>>, vector<1x1x128xf32>
    %72 = vector.shape_cast %71 : vector<1x1x128xf32> to vector<1x128xf32>
    %73 = vector.shape_cast %70 : vector<1x128xf32> to vector<1x1x128xf32>
    tpu.vector_store %arg4[%c0_19, %c0_20, %c0_21], %73 {strides = array<i32>} : memref<1x1x128xf32, #tpu.memory_space<vmem>>, vector<1x1x128xf32>,
    return
  }
  func.func @transform_0(%arg0: i32, %arg1: i32) -> (i32, i32, i32) {
    %c0_i32 = arith.constant 0 : i32
    %c0_i32_0 = arith.constant 0 : i32
    %c0_i32_1 = arith.constant 0 : i32
    return %arg0, %c0_i32, %c0_i32_0 : i32, i32, i32
  }
  func.func @transform_1(%arg0: i32, %arg1: i32) -> (i32, i32, i32, i32) {
    %c0_i32 = arith.constant 0 : i32
    %c0_i32_0 = arith.constant 0 : i32
    %c0_i32_1 = arith.constant 0 : i32
    return %arg0, %c0_i32, %c0_i32_0, %arg1 : i32, i32, i32, i32
  }
  func.func @transform_2(%arg0: i32, %arg1: i32) -> (i32, i32, i32) {
    %c0_i32 = arith.constant 0 : i32
    %c0_i32_0 = arith.constant 0 : i32
    return %arg0, %c0_i32, %arg1 : i32, i32, i32
  }
}

</mosaic_0001>

<bundles_post_ra>
// kernel: mul.10
= control target key start
LH: loop header
LB: loop body
LE: loop exit
PB: predicated region body
PF: predicated region fallthrough
CT: control target
= control target key end

     0   :  { %s188_s0 = inlined_call_operand.vmem [shape: f32[8,8,4], index: 0, kind: input, shape index: {}, may-alias: {0,1}]   ;;  %s189_s1 = inlined_call_operand.vmem [shape: f32[8,8,4], index: 1, kind: input, shape index: {}, may-alias: {0,1}]   ;;  %s190_s2 = inlined_call_operand.vmem [shape: f32[8,8,4], index: 2, kind: output, shape index: {}]  }
   0x1   :  { %v3_v0 = vld [vmem:[%s188_s0] sm:$0xf]  ;;  %v80_v2 = vld [vmem:[%s188_s0 + $0x4] sm:$0xf]  ;;  %v83_v5 = vld [vmem:[%s188_s0 + $0x8] sm:$0xf] }
   0x2   :  { %v4_v1 = vld [vmem:[%s189_s1] sm:$0xf]  ;;  %v81_v4 = vld [vmem:[%s189_s1 + $0x4] sm:$0xf]  ;;  %v84_v6 = vld [vmem:[%s189_s1 + $0x8] sm:$0xf] }
   0x3   :  { %v7_v3 = vmul.f32 %v4_v1, %v3_v0  ;;  %v16_v7 = vmul.f32 %v81_v4, %v80_v2  ;;  %v26_v8 = vmul.f32 %v84_v6, %v83_v5  ;;  %v86_v9 = vld [vmem:[%s188_s0 + $0xc] sm:$0xf]  ;;  %v89_v11 = vld [vmem:[%s188_s0 + $0x10] sm:$0xf]  ;;  %v92_v14 = vld [vmem:[%s188_s0 + $0x14] sm:$0xf] }
   0x4   :  { %v87_v10 = vld [vmem:[%s189_s1 + $0xc] sm:$0xf]  ;;  %v90_v13 = vld [vmem:[%s189_s1 + $0x10] sm:$0xf]  ;;  %v93_v16 = vld [vmem:[%s189_s1 + $0x14] sm:$0xf] }
   0x5   :  { %9 = vst [vmem:[%s190_s2] sm:$0xf] %v7_v3  ;;  %v36_v12 = vmul.f32 %v87_v10, %v86_v9  ;;  %v46_v15 = vmul.f32 %v90_v13, %v89_v11  ;;  %v95_v17 = vld [vmem:[%s188_s0 + $0x18] sm:$0xf]  ;;  %v56_v18 = vmul.f32 %v93_v16, %v92_v14  ;;  %v98_v20 = vld [vmem:[%s188_s0 + $0x1c] sm:$0xf] }
   0x6   :  { %82 = vst [vmem:[%s190_s2 + $0x4] sm:$0xf] %v16_v7  ;;  %v96_v19 = vld [vmem:[%s189_s1 + $0x18] sm:$0xf]  ;;  %v99_v22 = vld [vmem:[%s189_s1 + $0x1c] sm:$0xf] }
   0x7   :  { %85 = vst [vmem:[%s190_s2 + $0x8] sm:$0xf] %v26_v8  ;;  %v66_v21 = vmul.f32 %v96_v19, %v95_v17  ;;  %v76_v23 = vmul.f32 %v99_v22, %v98_v20 }
   0x8   :  { %88 = vst [vmem:[%s190_s2 + $0xc] sm:$0xf] %v36_v12 }
   0x9   :  { %91 = vst [vmem:[%s190_s2 + $0x10] sm:$0xf] %v46_v15 }
   0xa   :  { %94 = vst [vmem:[%s190_s2 + $0x14] sm:$0xf] %v56_v18 }
   0xb   :  { %97 = vst [vmem:[%s190_s2 + $0x18] sm:$0xf] %v66_v21 }
   0xc   :  { %100 = vst [vmem:[%s190_s2 + $0x1c] sm:$0xf] %v76_v23 }

// kernel: div.0
= control target key start
LH: loop header
LB: loop body
LE: loop exit
PB: predicated region body
PF: predicated region fallthrough
CT: control target
= control target key end

     0   :  { %s433_s0 = inlined_call_operand.vmem [shape: f32[8,8,4], index: 0, kind: input, shape index: {}]   ;;  %s434_s1 = inlined_call_operand.vmem [shape: f32[8,8,4], index: 1, kind: input, shape index: {}]   ;;  %s435_s2 = inlined_call_operand.vmem [shape: f32[8,8,4], index: 2, kind: output, shape index: {}]  }
   0x1   :  { %v4_v0 = vld [vmem:[%s434_s1] sm:$0xf]  ;;  %v193_v1 = vld [vmem:[%s434_s1 + $0x4] sm:$0xf]  ;;  %v253_v6 = vld [vmem:[%s434_s1 + $0x8] sm:$0xf] }
   0x2   :  { %213 = vrcp.f32 %v4_v0  ;;  %v16_v2 = vand.u32 2147483647, %v4_v0  ;;  %v18_v3 = vand.u32 2147483648, %v4_v0  ;;  %v39_v4 = vand.u32 2147483647, %v193_v1 }
   0x3   :  { %215 = vrcp.f32 %v193_v1  ;;  %v41_v5 = vand.u32 2147483648, %v193_v1  ;;  %vm12_vm0 = vweird.f32 %v4_v0  ;;  %v259_v7 = vld [vmem:[%s434_s1 + $0xc] sm:$0xf]  ;;  %vm35_vm1 = vweird.f32 %v193_v1  ;;  %v267_v10 = vld [vmem:[%s434_s1 + $0x10] sm:$0xf] }
   0x4   :  { %217 = vrcp.f32 %v253_v6  ;;  %v63_v8 = vand.u32 2147483647, %v253_v6  ;;  %v65_v9 = vand.u32 2147483648, %v253_v6  ;;  %vm269_vm2 = vcmp.eq.f32.partialorder %v16_v2, 8.507059e+37  ;;  %v288_v22 = vld [vmem:[%s434_s1 + $0x14] sm:$0xf] }
   0x5   :  { %219 = vrcp.f32 %v259_v7  ;;  %v19_v12 = vor.u32 1.1754944e-38, %v18_v3  ;;  %v87_v13 = vand.u32 2147483647, %v259_v7  ;;  %v89_v14 = vand.u32 2147483648, %v259_v7  ;;  %v309_v35 = vld [vmem:[%s434_s1 + $0x18] sm:$0xf] }
   0x6   :  { %221 = vrcp.f32 %v267_v10  ;;  %vm276_vm3 = vcmp.eq.f32.partialorder %v39_v4, 8.507059e+37  ;;  %v42_v17 = vor.u32 1.1754944e-38, %v41_v5  ;;  %v111_v18 = vand.u32 2147483647, %v267_v10  ;;  %v3_v48 = vld [vmem:[%s433_s0] sm:$0xf] }
   0x7   :  { %v113_v19 = vand.u32 2147483648, %v267_v10  ;;  %vm59_vm4 = vweird.f32 %v253_v6  ;;  %vm83_vm5 = vweird.f32 %v259_v7  ;;  %vm107_vm6 = vweird.f32 %v267_v10  ;;  %v192_v54 = vld [vmem:[%s433_s0 + $0x4] sm:$0xf]  ;;  %v210_v46 = vld [vmem:[%s433_s0 + $0x1c] sm:$0xf] }
   0x8   :  { %v214_v15 = vpop.eup %213  ;;  %vm290_vm8 = vcmp.eq.f32.partialorder %v63_v8, 8.507059e+37  ;;  %v66_v25 = vor.u32 1.1754944e-38, %v65_v9  ;;  %vm294_vm10 = vcmp.eq.f32.partialorder %v87_v13, 8.507059e+37  ;;  %v298_v29 = vor.u32 1.1754944e-38, %v89_v14  ;;  %v201_v13 = vld [vmem:[%s433_s0 + $0x10] sm:$0xf] }
   0x9   :  { %v216_v20 = vpop.eup %215  ;;  %v8_v21 = vmul.f32 %v214_v15, %v4_v0  ;;  %vm13_vm7 = vweird.f32 %v214_v15  ;;  %223 = vrcp.f32 %v288_v22  ;;  %vm302_vm11 = vcmp.eq.f32.partialorder %v111_v18, 8.507059e+37 }
   0xa   :  { %v31_v23 = vmul.f32 %v216_v20, %v193_v1  ;;  %v218_v26 = vpop.eup %217  ;;  %vm36_vm9 = vweird.f32 %v216_v20  ;;  %v114_v34 = vor.u32 1.1754944e-38, %v113_v19  ;;  %vm131_vm12 = vweird.f32 %v288_v22  ;;  %vm317_vm13 = vmor %vm12_vm0, %vm13_vm7  ;;  %v195_v1 = vld [vmem:[%s433_s0 + $0x8] sm:$0xf] }
   0xb   :  { %v9_v27 = vsub.f32 1.0, %v8_v21  ;;  %v220_v30 = vpop.eup %219  ;;  %v55_v32 = vmul.f32 %v218_v26, %v253_v6  ;;  %v135_v39 = vand.u32 2147483647, %v288_v22  ;;  %v137_v40 = vand.u32 2147483648, %v288_v22  ;;  %vm324_vm15 = vmor %vm35_vm1, %vm36_vm9 }
   0xc   :  { %v32_v31 = vsub.f32 1.0, %v31_v23  ;;  %v222_v36 = vpop.eup %221  ;;  %v79_v38 = vmul.f32 %v220_v30, %v259_v7  ;;  %vm60_vm14 = vweird.f32 %v218_v26  ;;  %vm84_vm0 = vweird.f32 %v220_v30  ;;  %v198_v7 = vld [vmem:[%s433_s0 + $0xc] sm:$0xf] }
   0xd   :  { %v10_v37 = vmul.f32 %v214_v15, %v9_v27  ;;  %v56_v43 = vsub.f32 1.0, %v55_v32  ;;  %v103_v44 = vmul.f32 %v222_v36, %v267_v10  ;;  %225 = vrcp.f32 %v309_v35  ;;  %vm340_vm4 = vmor %vm59_vm4, %vm60_vm14 }
   0xe   :  { %v33_v42 = vmul.f32 %v216_v20, %v32_v31  ;;  %v80_v47 = vsub.f32 1.0, %v79_v38  ;;  %vm108_vm1 = vweird.f32 %v222_v36  ;;  %v138_v57 = vor.u32 1.1754944e-38, %v137_v40 }
   0xf   :  { %v11_v45 = vadd.f32 %v214_v15, %v10_v37  ;;  %v57_v50 = vmul.f32 %v218_v26, %v56_v43  ;;  %v104_v51 = vsub.f32 1.0, %v103_v44  ;;  %v224_v52 = vpop.eup %223  ;;  %vm155_vm7 = vweird.f32 %v309_v35 }
  0x10   :  { %v34_v49 = vadd.f32 %v216_v20, %v33_v42  ;;  %v81_v56 = vmul.f32 %v220_v30, %v80_v47  ;;  %v127_v4 = vmul.f32 %v224_v52, %v288_v22  ;;  %v159_v9 = vand.u32 2147483647, %v309_v35  ;;  %v204_v22 = vld [vmem:[%s433_s0 + $0x14] sm:$0xf] }
  0x11   :  { %v15_v53 = vsel %vm317_vm13, %v214_v15, %v11_v45  ;;  %v58_v60 = vadd.f32 %v218_v26, %v57_v50  ;;  %v105_v62 = vmul.f32 %v222_v36, %v104_v51  ;;  %v211_v15 = vld [vmem:[%s434_s1 + $0x1c] sm:$0xf]  ;;  %v161_v24 = vand.u32 2147483648, %v309_v35 }
  0x12   :  { %v20_v58 = vsel %vm269_vm2, %v19_v12, %v15_v53  ;;  %v38_v59 = vsel %vm324_vm15, %v216_v20, %v34_v49  ;;  %vm352_vm2 = vmor %vm83_vm5, %vm84_vm0  ;;  %v82_v2 = vadd.f32 %v220_v30, %v81_v56  ;;  %v128_v14 = vsub.f32 1.0, %v127_v4 }
  0x13   :  { %v21_v63 = vmul.f32 %v20_v58, %v3_v48  ;;  %v43_v0 = vsel %vm276_vm3, %v42_v17, %v38_v59  ;;  %vm364_vm3 = vmor %vm107_vm6, %vm108_vm1  ;;  %v62_v6 = vsel %vm340_vm4, %v218_v26, %v58_v60  ;;  %v106_v8 = vadd.f32 %v222_v36, %v105_v62  ;;  %v226_v10 = vpop.eup %225 }
  0x14   :  { %v44_v5 = vmul.f32 %v192_v54, %v43_v0  ;;  %v67_v11 = vsel %vm290_vm8, %v66_v25, %v62_v6  ;;  %v86_v12 = vsel %vm352_vm2, %v220_v30, %v82_v2  ;;  %vm132_vm5 = vweird.f32 %v224_v52 }
  0x15   :  { %23 = vst [vmem:[%s435_s2] sm:$0xf] %v21_v63  ;;  %v68_v16 = vmul.f32 %v195_v1, %v67_v11  ;;  %v91_v17 = vsel %vm294_vm10, %v298_v29, %v86_v12  ;;  %v110_v18 = vsel %vm364_vm3, %v222_v36, %v106_v8  ;;  %v151_v19 = vmul.f32 %v226_v10, %v309_v35  ;;  %vm133_vm6 = vmor %vm131_vm12, %vm132_vm5 }
  0x16   :  { %194 = vst [vmem:[%s435_s2 + $0x4] sm:$0xf] %v44_v5  ;;  %v92_v20 = vmul.f32 %v198_v7, %v91_v17  ;;  %v115_v21 = vsel %vm302_vm11, %v114_v34, %v110_v18  ;;  %v129_v23 = vmul.f32 %v224_v52, %v128_v14  ;;  %vm156_vm8 = vweird.f32 %v226_v10  ;;  %v207_v34 = vld [vmem:[%s433_s0 + $0x18] sm:$0xf] }
  0x17   :  { %197 = vst [vmem:[%s435_s2 + $0x8] sm:$0xf] %v68_v16  ;;  %v116_v25 = vmul.f32 %v201_v13, %v115_v21  ;;  %v152_v26 = vsub.f32 1.0, %v151_v19  ;;  %227 = vrcp.f32 %v211_v15  ;;  %vm136_vm9 = vcmp.eq.f32.partialorder %v135_v39, 8.507059e+37  ;;  %vm157_vm10 = vmor %vm155_vm7, %vm156_vm8 }
  0x18   :  { %200 = vst [vmem:[%s435_s2 + $0xc] sm:$0xf] %v92_v20  ;;  %v130_v27 = vadd.f32 %v224_v52, %v129_v23  ;;  %v162_v30 = vor.u32 1.1754944e-38, %v161_v24  ;;  %vm160_vm11 = vcmp.eq.f32.partialorder %v159_v9, 8.507059e+37  ;;  %v185_v40 = vand.u32 2147483648, %v211_v15 }
  0x19   :  { %203 = vst [vmem:[%s435_s2 + $0x10] sm:$0xf] %v116_v25  ;;  %v153_v28 = vmul.f32 %v226_v10, %v152_v26  ;;  %vm179_vm12 = vweird.f32 %v211_v15  ;;  %v183_v42 = vand.u32 2147483647, %v211_v15 }
  0x1a   :  { %v134_v29 = vsel %vm133_vm6, %v224_v52, %v130_v27  ;;  %v186_v44 = vor.u32 1.1754944e-38, %v185_v40 }
  0x1b   :  { %v139_v31 = vsel %vm136_vm9, %v138_v57, %v134_v29  ;;  %v154_v32 = vadd.f32 %v226_v10, %v153_v28  ;;  %vm184_vm15 = vcmp.eq.f32.partialorder %v183_v42, 8.507059e+37 }
  0x1c   :  { %v140_v33 = vmul.f32 %v204_v22, %v139_v31 }
  0x1d   :  { %v228_v35 = vpop.eup %227  ;;  %v158_v36 = vsel %vm157_vm10, %v226_v10, %v154_v32 }
  0x1e   :  { %206 = vst [vmem:[%s435_s2 + $0x14] sm:$0xf] %v140_v33  ;;  %v163_v37 = vsel %vm160_vm11, %v162_v30, %v158_v36  ;;  %v175_v38 = vmul.f32 %v228_v35, %v211_v15  ;;  %vm180_vm13 = vweird.f32 %v228_v35 }
  0x1f   :  { %v164_v39 = vmul.f32 %v207_v34, %v163_v37  ;;  %vm181_vm14 = vmor %vm179_vm12, %vm180_vm13 }
  0x20   :  { %v176_v41 = vsub.f32 1.0, %v175_v38 }
  0x21   :  { %209 = vst [vmem:[%s435_s2 + $0x18] sm:$0xf] %v164_v39 }
  0x22   :  { %v177_v43 = vmul.f32 %v228_v35, %v176_v41 }
  0x24   :  { %v178_v45 = vadd.f32 %v228_v35, %v177_v43 }
  0x26   :  { %v182_v47 = vsel %vm181_vm14, %v228_v35, %v178_v45 }
  0x27   :  { %v187_v48 = vsel %vm184_vm15, %v186_v44, %v182_v47 }
  0x28   :  { %v188_v49 = vmul.f32 %v210_v46, %v187_v48 }
  0x2a   :  { %212 = vst [vmem:[%s435_s2 + $0x1c] sm:$0xf] %v188_v49 }

// kernel: golde_forward.1
= control target key start
LH: loop header
LB: loop body
LE: loop exit
PB: predicated region body
PF: predicated region fallthrough
CT: control target
= control target key end

     0   :  { %7 = vsyncpa [#allocation3], 0  ;;  %s697_s0 = inlined_call_operand.vmem [shape: f32[2,8,9], index: 0, kind: input, shape index: {}]   ;;  %s698_s1 = inlined_call_operand.vmem [shape: f32[2,4,8,128], index: 1, kind: input, shape index: {}]   ;;  %s699_s2 = inlined_call_operand.hbm [shape: f32[2,1,128], index: 2, kind: output, shape index: {}]  }
   0x1   :  { %9 = vsyncpa [#allocation3 + $0x1], 0  ;;  %s593_s9 = smov 0   ;;  %s595_s10 = smov 0  }
   0x2   :  { %s597_s11 = smov 0   ;;  %s599_s12 = smov 0  }
   0x3   :  { %s601_s13 = smov 0   ;;  %s603_s14 = smov 0  }
   0x4 LB: > { %s392_s15 = sadd.s32 4294967295, %s567_s14   ;;  %s393_s16 = sadd.s32 4294967294, %s567_s14   ;;  %s567_s14 = sphi %s603_s14, %s15_s14   ;;  %s563_s13 = sphi %s601_s13, %s706_s13   ;;  %s559_s12 = sphi %s599_s12, %s705_s12   ;;  %s555_s11 = sphi %s597_s11, %s704_s11   ;;  %s551_s10 = sphi %s595_s10, %s703_s10   ;;  %s547_s9 = sphi %s593_s9, %s702_s9  }
   0x5   : > { %s27_s17 = sadd.s32 1, %s563_s13  ;;  %s90_s18 = sadd.s32 1, %s555_s11 }
   0x6   : > { %p29_p0 = scmp.ge.s32.totalorder %s27_s17, 2  ;;  %p100_p1 = scmp.ne.s32.totalorder %s555_s11, %s551_s10 }
   0x7   : > { %p101_p2 = scmp.eq.s32.totalorder %s392_s15, 1  ;;  %p106_p3 = scmp.ne.s32.totalorder %s551_s10, %s547_s9 }
   0x8   : > { %s708_s17 = smov (%p29_p0, %s27_s17), 0  ;;  %p107_p5 = scmp.eq.s32.totalorder %s393_s16, 1 }
   0x9   : > { %p633_p4 = por %p101_p2, %p100_p1  ;;  %s85_s20 = ssub.s32 %s563_s13, %s708_s17 }
   0xa   : > { %p396_p6 = scmp.ge.s32.totalorder %s567_s14, 1  ;;  %p88_p7 = scmp.eq.s32.totalorder %s85_s20, 0 }
   0xb   : > { %p640_p8 = por %p107_p5, %p106_p3  ;;  %p143_p9 = scmp.lt.s32.totalorder %s567_s14, 3 }
   0xc   : > { %s646_s22 = scalar_select %p88_p7, %s555_s11, %s90_s18  }
   0xd   : > { %p144_p10 = pnand %p396_p6, %p143_p9 }
   0xe   : > { %p171_p11 = scmp.lt.s32.totalorder (!%p144_p10), %s559_s12, 1  ;;  %s169_s4 = sand.u32 (!%p144_p10), 1, %s551_s10  }
   0xf   : > { %147 = sbr.rel (%p144_p10) target bundleno = 228 (0xe4), region = 28  ;;  %s306_s7 = scalar_lea.hbm (!%p144_p10), %s699_s2, %s559_s12 }
  0x10   : > { %s170_s8 = scalar_lea.vmem (!%p144_p10), [#allocation2], %s169_s4  ;;  %s310_s16 = sshll.u32 (!%p144_p10), %s306_s7, 4  ;;  %s311_s16 = int_to_ptr.hbm [resolvable:$true] %s310_s16 }
  0x11   : > { %s308_s15 = sshll.u32 (!%p144_p10), %s170_s8, 4  ;;  %s297_s18 = scalar_lea.sflag (!%p144_p10), [#allocation3], %s169_s4  ;;  %s309_s15 = int_to_ptr.vmem [resolvable:$true] %s308_s15 }
  0x12   : > { %s503_s20 = sshra.s32 (!%p144_p10), %s311_s16, 4  ;;  %s504_s20 = int_to_ptr.hbm [resolvable:$true] %s503_s20 }
  0x13   : > { %p510_p1 = scmp.lt.s32.totalorder (!%p144_p10), %s504_s20, %s699_s2 }
  0x14   : > { %v569_v0 = vmov 7   ;;  %v570_v1 = vmov 1   ;;  %s650_s23 = scalar_select %p171_p11, %s559_s12, 1  ;;  %v571_v2 = vmov 8   ;;  %v572_v4 = vmov 2  }
  0x15   : > { %471 = vset.pattern.permute.xlu0 %v569_v0  ;;  %473 = vset.pattern.permute.xlu1 %v570_v1  ;;  %v573_v5 = vmov 0   ;;  %v574_v6 = vmov 5   ;;  %v575_v7 = vmov 6   ;;  %v576_v8 = vmov 4   ;;  %s509_s12 = scalar_lea.hbm %s699_s2, 2 }
  0x16   : > { %475 = vset.pattern.permute.xlu2 %v571_v2  ;;  %s397_s24 = sshll.u32 %s650_s23, 3  ;;  %v577_v9 = vmov 3   ;;  %s406_s28 = sshll.u32 %s650_s23, 5 }
  0x17   : > { %s174_s27 = scalar_lea.vmem %s697_s0, %s397_s24  ;;  %s182_s3 = scalar_lea.vmem %s698_s1, %s406_s28 }
  0x18   : > { %v183_v3 = vld [vmem:[%s174_s27] sm:$0xff]  ;;  %v400_v11 = vld [vmem:[%s182_s3 + $0x8] sm:$0xff]  ;;  %v401_v25 = vld [vmem:[%s182_s3 + $0x10] sm:$0xff]  ;;  %s505_s23 = scalar_lea.hbm %s504_s20, 1 }
  0x19   : > { %190 = vperm.xlu1 %473, %v183_v3   ;;  %214 = vperm.xlu0 %471, %v183_v3   ;;  %v221_v10 = vld [vmem:[%s182_s3] sm:$0xff]  ;;  %v230_v14 = vmul.f32 %v400_v11, %v400_v11  ;;  %v402_v27 = vld [vmem:[%s182_s3 + $0x18] sm:$0xff]  ;;  %p506_p12 = scmp.ne.s32.totalorder %s504_s20, %s505_s23  ;;  %p511_p2 = scmp.lt.s32.totalorder %s509_s12, %s505_s23 }
  0x1a   : > { %218 = vperm.xlu2 %475, %v183_v3   ;;  %v228_v12 = vmul.f32 %v221_v10, %v221_v10 }
  0x1b   : > { %p507_p13 = pnand %p506_p12, %p633_p4  ;;  %p512_p3 = por %p511_p2, %p510_p1 }
  0x1d   : > { %p508_p0 = pneg %p507_p13 }
  0x1f   : > { %p513_p5 = pnand %p512_p3, %p508_p0 }
  0x21   : > { %474 = vset.pattern.permute.xlu1 %v572_v4  ;;  %472 = vset.pattern.permute.xlu0 %v573_v5 }
  0x22   : > { %194 = vperm.xlu1 %474, %v183_v3   ;;  %186 = vperm.xlu0 %472, %v183_v3  }
  0x23   : > { %476 = vset.pattern.permute.xlu2 %v574_v6 }
  0x24   : > { %206 = vperm.xlu2 %476, %v183_v3  }
  0x2a   : > { %477 = vset.pattern.permute.xlu1 %v575_v7  ;;  %479 = vset.pattern.permute.xlu0 %v576_v8 }
  0x2b   : > { %210 = vperm.xlu1 %477, %v183_v3   ;;  %202 = vperm.xlu0 %479, %v183_v3  }
  0x2c   : > { %478 = vset.pattern.permute.xlu2 %v577_v9 }
  0x2d   : > { %198 = vperm.xlu2 %478, %v183_v3  }
  0x33   : > { %480 = vset.pattern.permute.xlu0 %v571_v2 }
  0x74   : > { %v219_v13 = vpop.permute.xlu2 %218 }
  0x7e   : > { %v207_v19 = vpop.permute.xlu2 %206 }
  0x7f   : > { %v244_v28 = vmul.f32 %v401_v25, %v207_v19 }
  0x87   : > { %v199_v29 = vpop.permute.xlu2 %198 }
  0x88   : > { %v245_v35 = vsub.f32 %v199_v29, %v244_v28 }
  0x8a   : > { %v248_v43 = vmul.f32 %v245_v35, %v245_v35 }
  0x8b   : > { %v215_v15 = vpop.permute.xlu0 %214  ;;  %v191_v16 = vpop.permute.xlu1 %190 }
  0x8c   : > { %v229_v17 = vadd.f32 %v228_v12, %v215_v15  ;;  %v264_v37 = vmul.f32 %v400_v11, %v191_v16 }
  0x8e   : > { %v231_v18 = vadd.f32 %v230_v14, %v229_v17 }
  0x90   : > { %481 = vrsqrt.f32 %v231_v18  ;;  %vm239_vm0 = vcmp.eq.f32.partialorder %v231_v18, inf  ;;  %v242_v40 = vand.u32 2147483648, %v231_v18  ;;  %vm241_vm1 = vcmp.eq.f32.partialorder %v231_v18, 0.0 }
  0x94   : > { %v195_v20 = vpop.permute.xlu1 %194  ;;  %v187_v21 = vpop.permute.xlu0 %186 }
  0x95   : > { %v263_v39 = vmul.f32 %v221_v10, %v187_v21 }
  0x96   : > { %v482_v22 = vpop.eup %481 }
  0x97   : > { %v233_v23 = vmul.f32 %v482_v22, %v231_v18  ;;  %v265_v46 = vadd.f32 %v264_v37, %v263_v39 }
  0x99   : > { %v234_v24 = vmul.f32 %v482_v22, %v233_v23 }
  0x9b   : > { %v235_v26 = vmul.f32 0.5, %v234_v24 }
  0x9d   : > { %v236_v30 = vsub.f32 1.5, %v235_v26  ;;  %v211_v31 = vpop.permute.xlu1 %210  ;;  %v203_v32 = vpop.permute.xlu0 %202 }
  0x9e   : > { %v246_v33 = vmul.f32 %v402_v27, %v211_v31 }
  0x9f   : > { %v237_v34 = vmul.f32 %v482_v22, %v236_v30 }
  0xa0   : > { %v247_v36 = vsub.f32 %v203_v32, %v246_v33 }
  0xa1   : > { %v238_v38 = vmul.f32 %v237_v34, %v231_v18 }
  0xa2   : > { %v249_v44 = vmul.f32 %v247_v36, %v247_v36 }
  0xa3   : > { %v240_v41 = vsel %vm239_vm0, %v231_v18, %v238_v38 }
  0xa4   : > { %v243_v42 = vsel %vm241_vm1, %v242_v40, %v240_v41  ;;  %v250_v48 = vadd.f32 %v249_v44, %v248_v43 }
  0xa5   : > { %v266_v45 = vmul.f32 %v243_v42, %v195_v20 }
  0xa6   : > { %483 = vrsqrt.f32 %v250_v48  ;;  %vm258_vm4 = vcmp.eq.f32.partialorder %v250_v48, inf  ;;  %v261_v9 = vand.u32 2147483648, %v250_v48  ;;  %vm260_vm5 = vcmp.eq.f32.partialorder %v250_v48, 0.0 }
  0xa7   : > { %v267_v47 = vsub.f32 %v265_v46, %v266_v45 }
  0xa9   : > { %v268_v49 = vmul.f32 %v267_v47, %v219_v13 }
  0xab   : > { %v269_v50 = vmax.f32 %v268_v49, 1.00001 }
  0xac   : > { %v484_v53 = vpop.eup %483 }
  0xad   : > { %v270_v51 = vmul.f32 %v269_v50, %v269_v50  ;;  %v252_v54 = vmul.f32 %v484_v53, %v250_v48 }
  0xaf   : > { %v403_v52 = vadd.f32 -1.0, %v270_v51  ;;  %v253_v57 = vmul.f32 %v484_v53, %v252_v54 }
  0xb1   : > { %485 = vrsqrt.f32 %v403_v52  ;;  %v254_v60 = vmul.f32 0.5, %v253_v57  ;;  %vm279_vm2 = vcmp.eq.f32.partialorder %v403_v52, inf  ;;  %v282_v1 = vand.u32 2147483648, %v403_v52 }
  0xb2   : > { %vm281_vm3 = vcmp.eq.f32.partialorder %v403_v52, 0.0 }
  0xb3   : > { %v255_v63 = vsub.f32 1.5, %v254_v60 }
  0xb5   : > { %v256_v4 = vmul.f32 %v484_v53, %v255_v63 }
  0xb7   : > { %v486_v55 = vpop.eup %485  ;;  %v257_v6 = vmul.f32 %v256_v4, %v250_v48 }
  0xb8   : > { %v273_v56 = vmul.f32 %v486_v55, %v403_v52 }
  0xb9   : > { %v259_v7 = vsel %vm258_vm4, %v250_v48, %v257_v6 }
  0xba   : > { %v274_v58 = vmul.f32 %v486_v55, %v273_v56  ;;  %v262_v11 = vsel %vm260_vm5, %v261_v9, %v259_v7 }
  0xbc   : > { %v275_v59 = vmul.f32 0.5, %v274_v58 }
  0xbe   : > { %v276_v61 = vsub.f32 1.5, %v275_v59 }
  0xc0   : > { %v277_v62 = vmul.f32 %v486_v55, %v276_v61 }
  0xc2   : > { %v278_v0 = vmul.f32 %v403_v52, %v277_v62 }
  0xc4   : > { %v280_v2 = vsel %vm279_vm2, %v403_v52, %v278_v0 }
  0xc5   : > { %v283_v3 = vsel %vm281_vm3, %v282_v1, %v280_v2 }
  0xc6   : > { %v284_v5 = vadd.f32 %v283_v3, %v269_v50 }
  0xc8   : > { %487 = vlog2.f32 %v284_v5 }
  0xce   : > { %v488_v8 = vpop.eup %487 }
  0xcf   : > { %v286_v10 = vmul.f32 0.6931472, %v488_v8 }
  0xd1   : > { %v287_v12 = vadd.f32 %v286_v10, %v262_v11 }
  0xd3   : > { %v288_v13 = vrot.slane %v287_v12, 4 }
  0xd5   : > { %v289_v14 = vadd.f32 %v288_v13, %v287_v12 }
  0xd7   : > { %v290_v15 = vrot.slane %v289_v14, 2 }
  0xd9   : > { %v291_v16 = vadd.f32 %v290_v15, %v289_v14 }
  0xdb   : > { %v292_v17 = vrot.slane %v291_v16, 1 }
  0xdd   : > { %v293_v18 = vadd.f32 %v292_v17, %v291_v16 }
  0xdf   : > { %v294_v19 = vsub.f32 12.0, %v293_v18 }
  0xe1   : > { %295 = vst [vmem:[%s170_s8] sm:$0x1] %v294_v19 }
  0xe2   : > { %516 = shalt.err (!%p513_p5)
}
  0xe3   : > { %407 = dma.vmem_to_hbm [thread:$0]  (%p633_p4), %s309_s15, 16, %s311_s16, %s297_s18  }
  0xe4 PF: > { %p413_p6 = scmp.ge.s32.totalorder %s567_s14, 2  ;;  %s322_s28 = sand.u32 1, %s547_s9  }
  0xe5   : > { %s323_s29 = scalar_lea.sflag [#allocation3], %s322_s28 }
  0xe6   : > { %p410_p7 = pnand %p413_p6, %p640_p8 }
  0xe8   : > { %p411_p9 = pneg %p410_p7 }
  0xea   : > { %542 = dma.done.wait (%p411_p9), %s323_s29, 16  }
  0xeb   : > { %544 = vsyncadd (%p411_p9), %s323_s29, 4294967280  ;;  %s15_s14 = sadd.s32 1, %s567_s14   ;;  %s702_s9 = smov %s551_s10 }
  0xec   : > { %p12_p10 = scmp.ge.s32.totalorder %s15_s14, 4   ;;  %s703_s10 = smov %s555_s11 }
  0xed   : > { %s704_s11 = smov %s646_s22  ;;  %s705_s12 = smov %s563_s13 }
  0xee   : > { %s706_s13 = smov %s708_s17  ;;  %14 = sbr.rel (!%p12_p10) target bundleno = 4 (0x4), region = 69 }
  0xf3   :  { %328 = vsyncpa [#allocation3], 1 }
  0xf4   :  { %330 = vsyncpa [#allocation3 + $0x1], 1 }

</bundles_post_ra>
